<compile_context>
chip_gen: v5e
topology: v5e:2x2
jax: 0.10.0
libtpu: 0.0.40
codegen_flags: <defaults>
</compile_context>

<pallas_src>
import functools

import jax
import jax.numpy as jnp
from jax import lax
from jax.experimental import pallas as pl
from jax.experimental.pallas import tpu as pltpu


def _luong_concat_kernel(enc_ref, dec_ref, we_ref, wd_ref, v_ref,
                         scores_ref, ctx_ref, *, s_valid):
    bt, S, M = enc_ref.shape
    A = we_ref.shape[0]

    enc = enc_ref[...]                          # (bt, S, M)  input dtype (f32 or bf16)
    dec = dec_ref[...]                          # (bt, M)

    # One tall matmul over all bt*S rows (pure leading-dim merge: S is sublane-aligned).
    enc_flat = enc.reshape(bt * S, M)

    # Contract M against the weights' last dim (native PyTorch [A, M] layout, no transpose).
    dn = (((1,), (1,)), ((), ()))
    e_enc = lax.dot_general(enc_flat, we_ref[...], dn,
                            preferred_element_type=jnp.float32)        # (bt*S, A) f32
    e_dec = lax.dot_general(dec, wd_ref[...], dn,
                            preferred_element_type=jnp.float32)        # (bt, A)   f32

    energy = jnp.tanh(e_enc.reshape(bt, S, A) + e_dec[:, None, :])     # (bt, S, A) f32

    # scores: VPU multiply + lane reduce (avoids an N=1 MXU matmul and a transpose);
    # result is laid out (bt, S) with S on the lane axis for a dense store.
    s = jnp.sum(energy * v_ref[...], axis=-1)                          # (bt, S) f32
    scores_ref[...] = s.astype(scores_ref.dtype)

    # Mask sequence padding (only present if the caller's S was not a multiple of 8).
    if s_valid < S:
        lane = lax.broadcasted_iota(jnp.int32, s.shape, 1)
        s = jnp.where(lane < s_valid, s, -jnp.inf)

    # Softmax over the sequence (lane) axis.
    m = jnp.max(s, axis=-1, keepdims=True)
    e = jnp.exp(s - m)
    p = e / jnp.sum(e, axis=-1, keepdims=True)                         # (bt, S) f32

    # context: broadcast-multiply + sublane reduce.
    # TODO(synk): if profiling shows the VALU slot saturating (small A, large M), route this
    # through the MXU as a batched dot_general (contract S) or chunk S with a fori_loop
    # accumulator to cap the (bt, S, M) temporary; it is accounted for in _pick_batch_tile.
    ctx_ref[...] = jnp.sum(p[:, :, None] * enc, axis=1).astype(ctx_ref.dtype)   # (bt, M)


def _vmem_limit_bytes():
    """~75% of physical VMEM per TensorCore (headroom for compiler scratch, semaphores and
    the double-buffered pipeline): ~96 MiB on v5e/v6e (128 MiB physical), ~48 MiB on v7x."""
    try:
        physical = int(pltpu.get_tpu_info().vmem_capacity_bytes)
    except Exception:
        physical = 64 * 1024 * 1024   # conservative (v7x-sized) fallback
    return min(int(physical * 0.75), 100 * 1024 * 1024)


def _pick_batch_tile(B, S, M, A, itemsize, vmem_limit_bytes, target_rows=512):
    """Batch elements per grid step.

    Sized against an honest per-step VMEM estimate (all live buffers, not just the enc
    block) and a ~512-row target so the energy-matmul LHS fills the MXU and the DMA blocks
    are large enough to approach the HBM roofline. Returns a multiple of 8 (or the full
    batch dim) and keeps >= 2 grid steps when B allows (v7x megacore sharding).
    """
    fp32 = 4
    per_bt = (2 * S * M * itemsize          # enc block, double-buffered
              + 2 * M * itemsize            # dec block, double-buffered
              + 2 * S * A * fp32            # e_enc + energy temporaries (f32)
              + S * M * fp32                # p[:, :, None] * enc reduce temporary (f32)
              + 2 * (S + M) * fp32)         # scores/context output blocks, double-buffered
    const = 2 * (2 * A * M + A) * itemsize  # W_enc, W_dec, v (assume double-buffered)
    usable = int(vmem_limit_bytes * 0.9)    # extra headroom inside the requested limit

    by_vmem = max(1, (usable - const) // max(per_bt, 1))
    by_rows = max(1, target_rows // max(S, 1))
    bt = max(1, min(B, by_rows, by_vmem))

    if B < 8:
        return B                            # full-dim block satisfies the (8,128) rule
    bt = max(8, (bt // 8) * 8)              # sublane-aligned second-to-last dim
    if bt >= B and B >= 16:
        # Keep at least two grid steps so dimension_semantics=("parallel",) can shard the
        # batch axis across v7x's two TensorCores.
        bt = max(8, ((pl.cdiv(B, 2) + 7) // 8) * 8)
    return bt


_WEIGHT_SINGLE_BUFFER_OK = True   # flipped to False if pl.Buffered(1) is rejected


def luong_concat_attention(encode_state, decode_state, W, v_w):
    """encode_state: [B,S,M], decode_state: [B,M] (f32 or bf16 -- bf16 halves HBM traffic on
    v6e/v7x), W: [A, 2M] (PyTorch Linear layout), v_w: [1, A] (PyTorch Linear layout).
    Returns (scores [B,S] f32, context [B,M] f32)."""
    global _WEIGHT_SINGLE_BUFFER_OK

    B, S, M = encode_state.shape
    A = W.shape[0]

    in_dtype = encode_state.dtype
    decode_state = decode_state.astype(in_dtype)
    # Split the concat-linear into encoder/decoder halves; keep native [A, M] layout and
    # match the streamed input dtype so weight DMA shrinks with bf16 inputs too.
    W = W.astype(in_dtype)
    v_w = v_w.astype(in_dtype)
    W_enc = W[:, :M]   # [A, M]
    W_dec = W[:, M:]   # [A, M]

    # Sublane-align S so the in-kernel reshapes are pure leading-dim merges (views).
    S_pad = ((S + 7) // 8) * 8
    if S_pad != S:
        encode_state = jnp.pad(encode_state, ((0, 0), (0, S_pad - S), (0, 0)))

    vmem_limit = _vmem_limit_bytes()
    itemsize = jnp.dtype(in_dtype).itemsize
    bt = _pick_batch_tile(B, S_pad, M, A, itemsize, vmem_limit)

    # No batch padding: the grid overhangs and Pallas masks the last block's reads/writes
    # (an HBM copy of encode_state via jnp.pad would cost as much as the kernel itself).
    grid = (pl.cdiv(B, bt),)

    kernel = functools.partial(_luong_concat_kernel, s_valid=S)
    out_shape = (jax.ShapeDtypeStruct((B, S_pad), jnp.float32),
                 jax.ShapeDtypeStruct((B, M), jnp.float32))

    # TODO(synk): for very large S*M (a single bt=8 block exceeding the VMEM budget), add an
    # S grid axis marked "arbitrary" with an online softmax.
    # TODO(synk): if deployed S and M are both < 128 and the store slot binds, pack scores
    # and context into one lane-dense output slab; output bytes are tiny vs enc here.

    def call(single_buffer_weights):
        def w_spec(shape):
            idx = lambda b: (0,) * len(shape)
            if single_buffer_weights:
                # Constant index_map => the block never changes; double-buffering it only
                # wastes VMEM that could go to a larger bt.
                return pl.BlockSpec(shape, idx, pipeline_mode=pl.Buffered(1))
            return pl.BlockSpec(shape, idx)

        return pl.pallas_call(
            kernel,
            out_shape=out_shape,
            grid_spec=pltpu.PrefetchScalarGridSpec(
                num_scalar_prefetch=0,
                grid=grid,
                in_specs=[
                    pl.BlockSpec((bt, S_pad, M), lambda b: (b, 0, 0)),   # encode_state tile
                    pl.BlockSpec((bt, M), lambda b: (b, 0)),             # decode_state tile
                    w_spec((A, M)),                                      # W_enc
                    w_spec((A, M)),                                      # W_dec
                    w_spec((1, A)),                                      # v (row vector)
                ],
                out_specs=[
                    pl.BlockSpec((bt, S_pad), lambda b: (b, 0)),         # scores (pre-softmax)
                    pl.BlockSpec((bt, M), lambda b: (b, 0)),             # context
                ],
            ),
            compiler_params=pltpu.CompilerParams(
                dimension_semantics=("parallel",),
                vmem_limit_bytes=vmem_limit,
            ),
        )(encode_state, decode_state, W_enc, W_dec, v_w)

    if _WEIGHT_SINGLE_BUFFER_OK:
        try:
            scores, context = call(True)
        except Exception:
            _WEIGHT_SINGLE_BUFFER_OK = False
            scores, context = call(False)
    else:
        scores, context = call(False)

    if S_pad != S:
        scores = scores[:, :S]
    return scores, context


def _reference(encode_state, decode_state, W, v_w):
    B, S, M = encode_state.shape
    dec_exp = jnp.broadcast_to(decode_state[:, None, :], (B, S, M))
    concat = jnp.concatenate([encode_state, dec_exp], axis=2)          # [B,S,2M]
    energy = jnp.tanh(concat @ W.T)                                    # [B,S,A]
    scores = (energy @ v_w.T)[..., 0]                                  # [B,S]
    probs = jax.nn.softmax(scores, axis=1)
    context = jnp.sum(probs[..., None] * encode_state, axis=1)         # [B,M]
    return scores, context


if __name__ == "__main__":
    B, S, M, A = 2, 8, 32, 32  # batch, seq, model_size, atten_size

    key = jax.random.PRNGKey(0)
    k1, k2, k3, k4 = jax.random.split(key, 4)

    encode_state = jax.random.normal(k1, (B, S, M), dtype=jnp.float32)
    decode_state = jax.random.normal(k2, (B, M), dtype=jnp.float32)

    # Deterministic "Linear" weights (PyTorch-style layout [out, in]).
    bound_W = 1.0 / jnp.sqrt(2.0 * M)
    bound_v = 1.0 / jnp.sqrt(float(A))
    W = jax.random.uniform(k3, (A, 2 * M), minval=-bound_W, maxval=bound_W,
                           dtype=jnp.float32)
    v_w = jax.random.uniform(k4, (1, A), minval=-bound_v, maxval=bound_v,
                             dtype=jnp.float32)

    ref_scores, ref_context = _reference(encode_state, decode_state, W, v_w)

    # f32 path (strict reference tolerance).
    scores, context = luong_concat_attention(encode_state, decode_state, W, v_w)
    jax.block_until_ready((scores, context))
    assert jnp.allclose(scores, ref_scores, atol=1e-5, rtol=1e-5)
    assert jnp.allclose(context, ref_context, atol=1e-5, rtol=1e-5)

    # bf16 streaming path (halves the dominant HBM stream on v6e/v7x); f32 outputs,
    # looser tolerance as expected for bf16 inputs.
    scores_bf, context_bf = luong_concat_attention(
        encode_state.astype(jnp.bfloat16), decode_state.astype(jnp.bfloat16), W, v_w)
    jax.block_until_ready((scores_bf, context_bf))
    assert jnp.allclose(scores_bf, ref_scores, atol=5e-2, rtol=5e-2)
    assert jnp.allclose(context_bf, ref_context, atol=5e-2, rtol=5e-2)

    print("KERNEL_OK")
</pallas_src>

<mosaic_0001>
module attributes {stable_mosaic.version = 11 : i64} {
  func.func @_luong_concat_kernel(%arg0: i32, %arg1: memref<2x8x32xf32, #tpu.memory_space<vmem>>, %arg2: memref<2x32xf32, #tpu.memory_space<vmem>>, %arg3: memref<32x32xf32, #tpu.memory_space<vmem>>, %arg4: memref<32x32xf32, #tpu.memory_space<vmem>>, %arg5: memref<1x32xf32, #tpu.memory_space<vmem>>, %arg6: memref<2x8xf32, #tpu.memory_space<vmem>>, %arg7: memref<2x32xf32, #tpu.memory_space<vmem>>) attributes {dimension_semantics = [#tpu.dimension_semantics<parallel>], iteration_bounds = array<i64: 1>, scalar_prefetch = 0 : i64, scratch_operands = 0 : i64, tpu.core_type = #tpu.core_type<tc>, window_params = [{transform_indices = @transform_0, window_bounds = array<i64: 2, 8, 32>}, {transform_indices = @transform_1, window_bounds = array<i64: 2, 32>}, {pipeline_mode = #tpu.pipeline_mode<synchronous>, transform_indices = @transform_2, window_bounds = array<i64: 32, 32>}, {pipeline_mode = #tpu.pipeline_mode<synchronous>, transform_indices = @transform_3, window_bounds = array<i64: 32, 32>}, {pipeline_mode = #tpu.pipeline_mode<synchronous>, transform_indices = @transform_4, window_bounds = array<i64: 1, 32>}, {transform_indices = @transform_5, window_bounds = array<i64: 2, 8>}, {transform_indices = @transform_6, window_bounds = array<i64: 2, 32>}]} {
    %c0 = arith.constant 0 : index
    %c0_0 = arith.constant 0 : index
    %c0_1 = arith.constant 0 : index
    %0 = vector.load %arg1[%c0, %c0_0, %c0_1] : memref<2x8x32xf32, #tpu.memory_space<vmem>>, vector<2x8x32xf32>
    %c0_2 = arith.constant 0 : index
    %c0_3 = arith.constant 0 : index
    %1 = vector.load %arg2[%c0_2, %c0_3] : memref<2x32xf32, #tpu.memory_space<vmem>>, vector<2x32xf32>
    %2 = vector.shape_cast %0 : vector<2x8x32xf32> to vector<16x32xf32>
    %c0_4 = arith.constant 0 : index
    %c0_5 = arith.constant 0 : index
    %3 = vector.load %arg3[%c0_4, %c0_5] : memref<32x32xf32, #tpu.memory_space<vmem>>, vector<32x32xf32>
    %cst = arith.constant dense<0.000000e+00> : vector<16x32xf32>
    %4 = tpu.matmul %2, %3, %cst {dimension_numbers = #tpu.dot_dimension_numbers<[1], [1], [0], [0], [0, 0, 1, 0], [], []>} : vector<16x32xf32>, vector<32x32xf32>, vector<16x32xf32> -> vector<16x32xf32>
    %c0_6 = arith.constant 0 : index
    %c0_7 = arith.constant 0 : index
    %5 = vector.load %arg4[%c0_6, %c0_7] : memref<32x32xf32, #tpu.memory_space<vmem>>, vector<32x32xf32>
    %cst_8 = arith.constant dense<0.000000e+00> : vector<2x32xf32>
    %6 = tpu.matmul %1, %5, %cst_8 {dimension_numbers = #tpu.dot_dimension_numbers<[1], [1], [0], [0], [0, 0, 1, 0], [], []>} : vector<2x32xf32>, vector<32x32xf32>, vector<2x32xf32> -> vector<2x32xf32>
    %7 = vector.shape_cast %4 : vector<16x32xf32> to vector<2x8x32xf32>
    %8 = vector.shape_cast %6 : vector<2x32xf32> to vector<2x1x32xf32>
    %9 = vector.broadcast %8 : vector<2x1x32xf32> to vector<2x8x32xf32>
    %10 = arith.addf %7, %9 : vector<2x8x32xf32>
    %11 = math.tanh %10 : vector<2x8x32xf32>
    %c0_9 = arith.constant 0 : index
    %c0_10 = arith.constant 0 : index
    %12 = vector.load %arg5[%c0_9, %c0_10] : memref<1x32xf32, #tpu.memory_space<vmem>>, vector<1x32xf32>
    %13 = vector.shape_cast %12 : vector<1x32xf32> to vector<1x1x32xf32>
    %14 = vector.broadcast %13 : vector<1x1x32xf32> to vector<2x8x32xf32>
    %15 = arith.mulf %11, %14 : vector<2x8x32xf32>
    %cst_11 = arith.constant dense<0.000000e+00> : vector<2x8xf32>
    %16 = vector.multi_reduction <add>, %15, %cst_11 [2] : vector<2x8x32xf32> to vector<2x8xf32>
    %c0_12 = arith.constant 0 : index
    %c0_13 = arith.constant 0 : index
    %17 = vector.load %arg6[%c0_12, %c0_13] : memref<2x8xf32, #tpu.memory_space<vmem>>, vector<2x8xf32>
    tpu.vector_store %arg6[%c0_12, %c0_13], %16 {strides = array<i32>} : memref<2x8xf32, #tpu.memory_space<vmem>>, vector<2x8xf32>,
    %cst_14 = arith.constant dense<0xFF800000> : vector<2xf32>
    %18 = vector.multi_reduction <maximumf>, %16, %cst_14 [1] : vector<2x8xf32> to vector<2xf32>
    %19 = vector.shape_cast %18 : vector<2xf32> to vector<2x1xf32>
    %20 = vector.broadcast %19 : vector<2x1xf32> to vector<2x8xf32>
    %21 = arith.subf %16, %20 : vector<2x8xf32>
    %22 = math.exp %21 : vector<2x8xf32>
    %cst_15 = arith.constant dense<0.000000e+00> : vector<2xf32>
    %23 = vector.multi_reduction <add>, %22, %cst_15 [1] : vector<2x8xf32> to vector<2xf32>
    %24 = vector.shape_cast %23 : vector<2xf32> to vector<2x1xf32>
    %25 = vector.broadcast %24 : vector<2x1xf32> to vector<2x8xf32>
    %26 = arith.divf %22, %25 : vector<2x8xf32>
    %27 = vector.shape_cast %26 : vector<2x8xf32> to vector<2x8x1xf32>
    %28 = vector.broadcast %27 : vector<2x8x1xf32> to vector<2x8x32xf32>
    %29 = arith.mulf %28, %0 : vector<2x8x32xf32>
    %cst_16 = arith.constant dense<0.000000e+00> : vector<2x32xf32>
    %30 = vector.multi_reduction <add>, %29, %cst_16 [1] : vector<2x8x32xf32> to vector<2x32xf32>
    %c0_17 = arith.constant 0 : index
    %c0_18 = arith.constant 0 : index
    %31 = vector.load %arg7[%c0_17, %c0_18] : memref<2x32xf32, #tpu.memory_space<vmem>>, vector<2x32xf32>
    tpu.vector_store %arg7[%c0_17, %c0_18], %30 {strides = array<i32>} : memref<2x32xf32, #tpu.memory_space<vmem>>, vector<2x32xf32>,
    return
  }
  func.func @transform_0(%arg0: i32) -> (i32, i32, i32) {
    %c0_i32 = arith.constant 0 : i32
    %c0_i32_0 = arith.constant 0 : i32
    %c0_i32_1 = arith.constant 0 : i32
    return %arg0, %c0_i32, %c0_i32_0 : i32, i32, i32
  }
  func.func @transform_1(%arg0: i32) -> (i32, i32) {
    %c0_i32 = arith.constant 0 : i32
    %c0_i32_0 = arith.constant 0 : i32
    return %arg0, %c0_i32 : i32, i32
  }
  func.func @transform_2(%arg0: i32) -> (i32, i32) {
    %c0_i32 = arith.constant 0 : i32
    %c0_i32_0 = arith.constant 0 : i32
    %c0_i32_1 = arith.constant 0 : i32
    return %c0_i32, %c0_i32_0 : i32, i32
  }
  func.func @transform_3(%arg0: i32) -> (i32, i32) {
    %c0_i32 = arith.constant 0 : i32
    %c0_i32_0 = arith.constant 0 : i32
    %c0_i32_1 = arith.constant 0 : i32
    return %c0_i32, %c0_i32_0 : i32, i32
  }
  func.func @transform_4(%arg0: i32) -> (i32, i32) {
    %c0_i32 = arith.constant 0 : i32
    %c0_i32_0 = arith.constant 0 : i32
    %c0_i32_1 = arith.constant 0 : i32
    return %c0_i32, %c0_i32_0 : i32, i32
  }
  func.func @transform_5(%arg0: i32) -> (i32, i32) {
    %c0_i32 = arith.constant 0 : i32
    %c0_i32_0 = arith.constant 0 : i32
    return %arg0, %c0_i32 : i32, i32
  }
  func.func @transform_6(%arg0: i32) -> (i32, i32) {
    %c0_i32 = arith.constant 0 : i32
    %c0_i32_0 = arith.constant 0 : i32
    return %arg0, %c0_i32 : i32, i32
  }
}

module attributes {stable_mosaic.version = 11 : i64} {
  func.func @_luong_concat_kernel(%arg0: i32, %arg1: memref<2x8x32xf32, #tpu.memory_space<vmem>>, %arg2: memref<2x32xf32, #tpu.memory_space<vmem>>, %arg3: memref<32x32xf32, #tpu.memory_space<vmem>>, %arg4: memref<32x32xf32, #tpu.memory_space<vmem>>, %arg5: memref<1x32xf32, #tpu.memory_space<vmem>>, %arg6: memref<2x8xf32, #tpu.memory_space<vmem>>, %arg7: memref<2x32xf32, #tpu.memory_space<vmem>>) attributes {dimension_semantics = [#tpu.dimension_semantics<parallel>], iteration_bounds = array<i64: 1>, scalar_prefetch = 0 : i64, scratch_operands = 0 : i64, tpu.core_type = #tpu.core_type<tc>, window_params = [{transform_indices = @transform_0, window_bounds = array<i64: 2, 8, 32>}, {transform_indices = @transform_1, window_bounds = array<i64: 2, 32>}, {pipeline_mode = #tpu.pipeline_mode<synchronous>, transform_indices = @transform_2, window_bounds = array<i64: 32, 32>}, {pipeline_mode = #tpu.pipeline_mode<synchronous>, transform_indices = @transform_3, window_bounds = array<i64: 32, 32>}, {pipeline_mode = #tpu.pipeline_mode<synchronous>, transform_indices = @transform_4, window_bounds = array<i64: 1, 32>}, {transform_indices = @transform_5, window_bounds = array<i64: 2, 8>}, {transform_indices = @transform_6, window_bounds = array<i64: 2, 32>}]} {
    %c0 = arith.constant 0 : index
    %c0_0 = arith.constant 0 : index
    %c0_1 = arith.constant 0 : index
    %0 = vector.load %arg1[%c0, %c0_0, %c0_1] : memref<2x8x32xf32, #tpu.memory_space<vmem>>, vector<2x8x32xf32>
    %c0_2 = arith.constant 0 : index
    %c0_3 = arith.constant 0 : index
    %1 = vector.load %arg2[%c0_2, %c0_3] : memref<2x32xf32, #tpu.memory_space<vmem>>, vector<2x32xf32>
    %2 = vector.shape_cast %0 : vector<2x8x32xf32> to vector<16x32xf32>
    %c0_4 = arith.constant 0 : index
    %c0_5 = arith.constant 0 : index
    %3 = vector.load %arg3[%c0_4, %c0_5] : memref<32x32xf32, #tpu.memory_space<vmem>>, vector<32x32xf32>
    %cst = arith.constant dense<0.000000e+00> : vector<16x32xf32>
    %4 = tpu.matmul %2, %3, %cst {dimension_numbers = #tpu.dot_dimension_numbers<[1], [1], [0], [0], [0, 0, 1, 0], [], []>} : vector<16x32xf32>, vector<32x32xf32>, vector<16x32xf32> -> vector<16x32xf32>
    %c0_6 = arith.constant 0 : index
    %c0_7 = arith.constant 0 : index
    %5 = vector.load %arg4[%c0_6, %c0_7] : memref<32x32xf32, #tpu.memory_space<vmem>>, vector<32x32xf32>
    %cst_8 = arith.constant dense<0.000000e+00> : vector<2x32xf32>
    %6 = tpu.matmul %1, %5, %cst_8 {dimension_numbers = #tpu.dot_dimension_numbers<[1], [1], [0], [0], [0, 0, 1, 0], [], []>} : vector<2x32xf32>, vector<32x32xf32>, vector<2x32xf32> -> vector<2x32xf32>
    %7 = vector.shape_cast %4 : vector<16x32xf32> to vector<2x8x32xf32>
    %8 = vector.shape_cast %6 : vector<2x32xf32> to vector<2x1x32xf32>
    %9 = vector.broadcast %8 : vector<2x1x32xf32> to vector<2x8x32xf32>
    %10 = arith.addf %7, %9 : vector<2x8x32xf32>
    %11 = math.tanh %10 : vector<2x8x32xf32>
    %c0_9 = arith.constant 0 : index
    %c0_10 = arith.constant 0 : index
    %12 = vector.load %arg5[%c0_9, %c0_10] : memref<1x32xf32, #tpu.memory_space<vmem>>, vector<1x32xf32>
    %13 = vector.shape_cast %12 : vector<1x32xf32> to vector<1x1x32xf32>
    %14 = vector.broadcast %13 : vector<1x1x32xf32> to vector<2x8x32xf32>
    %15 = arith.mulf %11, %14 : vector<2x8x32xf32>
    %cst_11 = arith.constant dense<0.000000e+00> : vector<2x8xf32>
    %16 = vector.multi_reduction <add>, %15, %cst_11 [2] : vector<2x8x32xf32> to vector<2x8xf32>
    %c0_12 = arith.constant 0 : index
    %c0_13 = arith.constant 0 : index
    %17 = vector.load %arg6[%c0_12, %c0_13] : memref<2x8xf32, #tpu.memory_space<vmem>>, vector<2x8xf32>
    tpu.vector_store %arg6[%c0_12, %c0_13], %16 {strides = array<i32>} : memref<2x8xf32, #tpu.memory_space<vmem>>, vector<2x8xf32>,
    %cst_14 = arith.constant dense<0xFF800000> : vector<2xf32>
    %18 = vector.multi_reduction <maximumf>, %16, %cst_14 [1] : vector<2x8xf32> to vector<2xf32>
    %19 = vector.shape_cast %18 : vector<2xf32> to vector<2x1xf32>
    %20 = vector.broadcast %19 : vector<2x1xf32> to vector<2x8xf32>
    %21 = arith.subf %16, %20 : vector<2x8xf32>
    %22 = math.exp %21 : vector<2x8xf32>
    %cst_15 = arith.constant dense<0.000000e+00> : vector<2xf32>
    %23 = vector.multi_reduction <add>, %22, %cst_15 [1] : vector<2x8xf32> to vector<2xf32>
    %24 = vector.shape_cast %23 : vector<2xf32> to vector<2x1xf32>
    %25 = vector.broadcast %24 : vector<2x1xf32> to vector<2x8xf32>
    %26 = arith.divf %22, %25 : vector<2x8xf32>
    %27 = vector.shape_cast %26 : vector<2x8xf32> to vector<2x8x1xf32>
    %28 = vector.broadcast %27 : vector<2x8x1xf32> to vector<2x8x32xf32>
    %29 = arith.mulf %28, %0 : vector<2x8x32xf32>
    %cst_16 = arith.constant dense<0.000000e+00> : vector<2x32xf32>
    %30 = vector.multi_reduction <add>, %29, %cst_16 [1] : vector<2x8x32xf32> to vector<2x32xf32>
    %c0_17 = arith.constant 0 : index
    %c0_18 = arith.constant 0 : index
    %31 = vector.load %arg7[%c0_17, %c0_18] : memref<2x32xf32, #tpu.memory_space<vmem>>, vector<2x32xf32>
    tpu.vector_store %arg7[%c0_17, %c0_18], %30 {strides = array<i32>} : memref<2x32xf32, #tpu.memory_space<vmem>>, vector<2x32xf32>,
    return
  }
  func.func @transform_0(%arg0: i32) -> (i32, i32, i32) {
    %c0_i32 = arith.constant 0 : i32
    %c0_i32_0 = arith.constant 0 : i32
    %c0_i32_1 = arith.constant 0 : i32
    return %arg0, %c0_i32, %c0_i32_0 : i32, i32, i32
  }
  func.func @transform_1(%arg0: i32) -> (i32, i32) {
    %c0_i32 = arith.constant 0 : i32
    %c0_i32_0 = arith.constant 0 : i32
    return %arg0, %c0_i32 : i32, i32
  }
  func.func @transform_2(%arg0: i32) -> (i32, i32) {
    %c0_i32 = arith.constant 0 : i32
    %c0_i32_0 = arith.constant 0 : i32
    %c0_i32_1 = arith.constant 0 : i32
    return %c0_i32, %c0_i32_0 : i32, i32
  }
  func.func @transform_3(%arg0: i32) -> (i32, i32) {
    %c0_i32 = arith.constant 0 : i32
    %c0_i32_0 = arith.constant 0 : i32
    %c0_i32_1 = arith.constant 0 : i32
    return %c0_i32, %c0_i32_0 : i32, i32
  }
  func.func @transform_4(%arg0: i32) -> (i32, i32) {
    %c0_i32 = arith.constant 0 : i32
    %c0_i32_0 = arith.constant 0 : i32
    %c0_i32_1 = arith.constant 0 : i32
    return %c0_i32, %c0_i32_0 : i32, i32
  }
  func.func @transform_5(%arg0: i32) -> (i32, i32) {
    %c0_i32 = arith.constant 0 : i32
    %c0_i32_0 = arith.constant 0 : i32
    return %arg0, %c0_i32 : i32, i32
  }
  func.func @transform_6(%arg0: i32) -> (i32, i32) {
    %c0_i32 = arith.constant 0 : i32
    %c0_i32_0 = arith.constant 0 : i32
    return %arg0, %c0_i32 : i32, i32
  }
}

</mosaic_0001>

<bundles_post_ra>
// kernel: tpu_custom_call.1
= control target key start
LH: loop header
LB: loop body
LE: loop exit
PB: predicated region body
PF: predicated region fallthrough
CT: control target
= control target key end

     0   :  { %12 = vsyncpa [#allocation3], 0  ;;  %s629_s0 = inlined_call_operand.hbm [shape: f32[2,8,32], index: 0, kind: input, shape index: {}]   ;;  %s630_s1 = inlined_call_operand.hbm [shape: f32[2,32], index: 1, kind: input, shape index: {}]   ;;  %s631_s2 = inlined_call_operand.hbm [shape: f32[32,32], index: 2, kind: input, shape index: {}]   ;;  %s632_s3 = inlined_call_operand.hbm [shape: f32[32,32], index: 3, kind: input, shape index: {}]   ;;  %s633_s4 = inlined_call_operand.vmem [shape: f32[1,32], index: 4, kind: input, shape index: {}]   ;;  %s634_s5 = inlined_call_operand.hbm [shape: f32[2,8], index: 5, kind: output, shape index: {0}]   ;;  %s635_s6 = inlined_call_operand.hbm [shape: f32[2,32], index: 6, kind: output, shape index: {1}]  }
   0x1   :  { %13 = vsyncpa [#allocation6], 0 }
   0x2   :  { %14 = vsyncpa [#allocation9], 0 }
   0x3   :  { %15 = vsyncpa [#allocation4], 0  ;;  %s35_s23 = sshll.u32 %s630_s1, 4  ;;  %s36_s23 = int_to_ptr.hbm [resolvable:$true] %s35_s23 }
   0x4   :  { %16 = vsyncpa [#allocation12], 0  ;;  %s531_s24 = smov [#allocation5]   ;;  %s21_s28 = sshll.u32 %s629_s0, 4  ;;  %s22_s28 = int_to_ptr.hbm [resolvable:$true] %s21_s28 }
   0x5   :  { %s37_s25 = sshll.u32 %s531_s24, 4  ;;  %s532_s29 = smov [#allocation2]   ;;  %s38_s25 = int_to_ptr.vmem [resolvable:$true] %s37_s25 }
   0x6   :  { %40 = dma.hbm_to_vmem [thread:$0]  %s36_s23, 32, %s38_s25, [#allocation6]  }
   0x7   :  { %s23_s30 = sshll.u32 %s532_s29, 4  ;;  %s533_s7 = smov 128   ;;  %s24_s30 = int_to_ptr.vmem [resolvable:$true] %s23_s30 }
   0x8   :  { %s534_s8 = smov 8   ;;  %s45_s1 = sshll.u32 %s631_s2, 4  ;;  %s46_s1 = int_to_ptr.hbm [resolvable:$true] %s45_s1 }
   0x9   :  { %29 = dma.hbm_to_vmem [thread:$0]  %s22_s28, 256, %s24_s30, [#allocation3], %s533_s7, %s533_s7, %s534_s8  }
   0xa   :  { %s535_s11 = smov [#allocation7]   ;;  %s58_s0 = sshll.u32 %s632_s3, 4  ;;  %s59_s0 = int_to_ptr.hbm [resolvable:$true] %s58_s0 }
   0xb   :  { %s47_s12 = sshll.u32 %s535_s11, 4  ;;  %s536_s15 = smov [#allocation8]   ;;  %s48_s12 = int_to_ptr.vmem [resolvable:$true] %s47_s12 }
   0xc   :  { %53 = dma.hbm_to_vmem [thread:$0]  %s46_s1, 512, %s48_s12, [#allocation6], %s533_s7, %s533_s7, %s534_s8  }
   0xd   :  { %s60_s16 = sshll.u32 %s536_s15, 4  ;;  %s61_s16 = int_to_ptr.vmem [resolvable:$true] %s60_s16 }
   0xe   :  { %66 = dma.hbm_to_vmem [thread:$0]  %s59_s0, 512, %s61_s16, [#allocation9], %s533_s7, %s533_s7, %s534_s8  }
   0xf   :  { %521 = dma.done.wait [#allocation3], 256  }
  0x10   :  { %522 = vsyncadd [#allocation3], 4294967040 }
  0x11   :  { %523 = dma.done.wait [#allocation6], 544  }
  0x12   :  { %524 = vsyncadd [#allocation6], 4294966752 }
  0x13   :  { %525 = dma.done.wait [#allocation9], 512  }
  0x14   :  { %526 = vsyncadd [#allocation9], 4294966784  ;;  %vm92_vm0 = vcmask 261120   ;;  %v91_v0 = vld [vmem:[#allocation7 + $0x18] sm:$0xff]  ;;  %v90_v2 = vld [vmem:[#allocation7 + $0x10] sm:$0xff]  ;;  %v197_v27 = vlaneseq  ;;  %vm201_vm1 = vcmask 1041409  }
  0x15   :  { %v137_v1 = vld [vmem:[#allocation8 + $0x18] sm:$0xff]  ;;  %348 = vmatpush.xpose.msk.msra.mxu2 %vm92_vm0, %v91_v0  ;;  %337 = vmatpush.xpose.msk.msra.mxu0 %vm92_vm0, %v91_v0  ;;  %v136_v3 = vld [vmem:[#allocation8 + $0x10] sm:$0xff]  ;;  %v89_v4 = vld [vmem:[#allocation7 + $0x8] sm:$0xff]  ;;  %vm204_vm2 = vcmask 58368   ;;  %v537_v34 = vmov 0   ;;  %s309_s18 = sshll.u32 %s634_s5, 4  ;;  %s310_s18 = int_to_ptr.hbm [resolvable:$true] %s309_s18 }
  0x16   :  { %343 = vmatpush.xpose.msk.msra.mxu1 %vm92_vm0, %v137_v1  ;;  %v135_v5 = vld [vmem:[#allocation8 + $0x8] sm:$0xff]  ;;  %v88_v6 = vld [vmem:[#allocation7] sm:$0xff]  ;;  %v598_v8 = vld [vmem:[#allocation2 + $0x8] sm:$0xff]  ;;  %v198_v28 = vand.u32 127, %v197_v27  ;;  %362 = vset.pattern.permute.xlu2 %v537_v34  ;;  %s538_s19 = smov [#allocation10]   ;;  %s539_s5 = smov [#allocation11]  }
  0x17   :  { %v134_v7 = vld [vmem:[#allocation8] sm:$0xff]  ;;  %v87_v9 = vld [vmem:[#allocation5] sm:$0x3]  ;;  %v601_v10 = vld [vmem:[#allocation2] sm:$0xff]  ;;  %361 = vset.pattern.permute.xlu1 %v537_v34  ;;  %363 = vset.pattern.permute.xlu0 %v537_v34  ;;  %s307_s20 = sshll.u32 %s538_s19, 4  ;;  %s318_s21 = sshll.u32 %s539_s5, 4  ;;  %s308_s20 = int_to_ptr.vmem [resolvable:$true] %s307_s20  ;;  %s319_s21 = int_to_ptr.vmem [resolvable:$true] %s318_s21 }
  0x18   :  { %v364_v19 = vld [vmem:[%s633_s4] ss:$0 sm:$0xff]  ;;  %s320_s24 = sshll.u32 %s635_s6, 4  ;;  %vm300_vm11 = vcmask 254976   ;;  %s321_s24 = int_to_ptr.hbm [resolvable:$true] %s320_s24 }
  0x19   :  { %349 = vmatpush.xpose.msk.msra.mxu2 %vm92_vm0, %v90_v2  ;;  %338 = vmatpush.xpose.msk.msra.mxu0 %vm92_vm0, %v90_v2 }
  0x1a   :  { %344 = vmatpush.xpose.msk.msra.mxu1 %vm92_vm0, %v136_v3 }
  0x1d   :  { %350 = vmatpush.xpose.msk.msra.mxu2 %vm92_vm0, %v89_v4  ;;  %339 = vmatpush.xpose.msk.msra.mxu0 %vm92_vm0, %v89_v4 }
  0x1e   :  { %345 = vmatpush.xpose.msk.msra.mxu1 %vm92_vm0, %v135_v5 }
  0x21   :  { %351 = vmatpush.xpose.msk.msra.mxu2 %vm92_vm0, %v88_v6  ;;  %340 = vmatpush.xpose.msk.msra.mxu0 %vm92_vm0, %v88_v6 }
  0x22   :  { %346 = vmatpush.xpose.msk.msra.mxu1 %vm92_vm0, %v134_v7 }
  0x24   :  { %342 = vmatmul.msk.f32.vlgmr.msra.gmra.mxu2 %vm92_vm0, %v598_v8  ;;  %341 = vmatmul.msk.f32.vlgmr.msra.gmra.mxu0 %vm92_vm0, %v601_v10 }
  0x25   :  { %347 = vmatmul.msk.f32.vlgmr.msra.gmra.mxu1 %vm92_vm0, %v87_v9 }
  0xa1   :  { %v128_v14 = vpop.f32.mrf.mxu0 }
  0xa2   :  { %v170_v11 = vpop.f32.mrf.mxu1 }
  0xa3   :  { %v174_v12 = vrot.slane %v170_v11, 1  ;;  %v175_v13 = vperm.slane %v170_v11, 0 }
  0xa5   :  { %v179_v15 = vadd.f32 %v175_v13, %v128_v14  ;;  %v176_v16 = vperm.slane %v174_v12, 0 }
  0xa7   :  { %365 = vtanh.f32 %v179_v15  ;;  %v131_v17 = vpop.f32.mrf.mxu2 }
  0xa8   :  { %v180_v18 = vadd.f32 %v176_v16, %v131_v17 }
  0xaa   :  { %367 = vtanh.f32 %v180_v18 }
  0xad   :  { %v366_v20 = vpop.eup %365 }
  0xae   :  { %v187_v21 = vmul.f32 %v366_v20, %v364_v19 }
  0xb0   :  { %v189_v22 = vsel %vm92_vm0, %v187_v21, 0.0  ;;  %v368_v23 = vpop.eup %367 }
  0xb1   :  { %190 = vadd.xlane.f32.xlu0 %v189_v22  ;;  %v188_v24 = vmul.f32 %v368_v23, %v364_v19 }
  0xb3   :  { %v192_v25 = vsel %vm92_vm0, %v188_v24, 0.0 }
  0xb9   :  { %193 = vadd.xlane.f32.xlu0 %v192_v25 }
 0x124   :  { %v191_v26 = vpop.xlane.xlu0 %190 }
 0x125   :  { %v199_v30 = vperm.slane %v191_v26, %v198_v28 }
 0x12c   :  { %v194_v29 = vpop.xlane.xlu0 %193 }
 0x12d   :  { %v200_v31 = vperm.slane %v194_v29, %v198_v28 }
 0x12f   :  { %v202_v32 = vsel %vm201_vm1, %v200_v31, %v199_v30 }
 0x130   :  { %v206_v33 = vsel %vm204_vm2, %v202_v32, -inf  ;;  %205 = vst.msk [vmem:[#allocation10] sm:$0x3] %vm204_vm2, %v202_v32 }
 0x131   :  { %207 = vmax.xlane.f32.xlu1 %v206_v33  ;;  %312 = dma.vmem_to_hbm [thread:$0]  %s308_s20, 32, %s310_s18, [#allocation4]  }
 0x1a4   :  { %v208_v35 = vpop.xlane.xlu1 %207 }
 0x1a5   :  { %v210_v36 = vperm.slane %v208_v35, 0  ;;  %v211_v37 = vperm.slane %v208_v35, 1 }
 0x1a7   :  { %v214_v38 = vsub.f32 %v191_v26, %v210_v36  ;;  %v215_v39 = vsub.f32 %v194_v29, %v211_v37 }
 0x1a9   :  { %v216_v40 = vmul.f32 1.442695, %v214_v38  ;;  %v218_v41 = vmul.f32 1.442695, %v215_v39 }
 0x1ab   :  { %369 = vpow2.f32 %v216_v40 }
 0x1ac   :  { %371 = vpow2.f32 %v218_v41 }
 0x1b1   :  { %v370_v42 = vpop.eup %369 }
 0x1b2   :  { %v372_v43 = vpop.eup %371  ;;  %223 = vperm.xlu1 %361, %v370_v42  }
 0x1b3   :  { %226 = vperm.xlu2 %362, %v372_v43  }
 0x20d   :  { %v227_v44 = vpop.permute.xlu2 %226 }
 0x20e   :  { %v229_v46 = vperm.slane %v227_v44, %v198_v28 }
 0x224   :  { %v224_v45 = vpop.permute.xlu1 %223 }
 0x225   :  { %v228_v47 = vperm.slane %v224_v45, %v198_v28 }
 0x227   :  { %v230_v48 = vsel %vm201_vm1, %v229_v46, %v228_v47 }
 0x228   :  { %v232_v49 = vsel %vm204_vm2, %v230_v48, 0.0 }
 0x229   :  { %233 = vadd.xlane.f32.xlu2 %v232_v49 }
 0x29c   :  { %v234_v50 = vpop.xlane.xlu2 %233 }
 0x29d   :  { %v236_v51 = vperm.slane %v234_v50, 0  ;;  %v237_v52 = vperm.slane %v234_v50, 1 }
 0x29f   :  { %373 = vrcp.f32 %v236_v51  ;;  %v251_v59 = vand.u32 2147483648, %v236_v51  ;;  %v266_v60 = vand.u32 2147483648, %v237_v52  ;;  %v249_v62 = vand.u32 2147483647, %v236_v51 }
 0x2a0   :  { %375 = vrcp.f32 %v237_v52  ;;  %v264_v0 = vand.u32 2147483647, %v237_v52  ;;  %vm245_vm5 = vweird.f32 %v236_v51  ;;  %vm260_vm6 = vweird.f32 %v237_v52 }
 0x2a1   :  { %v252_v3 = vor.u32 1.1754944e-38, %v251_v59  ;;  %v267_v4 = vor.u32 1.1754944e-38, %v266_v60  ;;  %vm250_vm9 = vcmp.eq.f32.partialorder %v249_v62, 8.507059e+37 }
 0x2a2   :  { %vm265_vm10 = vcmp.eq.f32.partialorder %v264_v0, 8.507059e+37 }
 0x2a5   :  { %v374_v53 = vpop.eup %373 }
 0x2a6   :  { %v376_v54 = vpop.eup %375  ;;  %v241_v55 = vmul.f32 %v374_v53, %v236_v51  ;;  %vm246_vm3 = vweird.f32 %v374_v53 }
 0x2a7   :  { %v256_v56 = vmul.f32 %v376_v54, %v237_v52  ;;  %vm261_vm4 = vweird.f32 %v376_v54  ;;  %vm247_vm7 = vmor %vm245_vm5, %vm246_vm3 }
 0x2a8   :  { %v242_v57 = vsub.f32 1.0, %v241_v55  ;;  %vm262_vm8 = vmor %vm260_vm6, %vm261_vm4 }
 0x2a9   :  { %v257_v58 = vsub.f32 1.0, %v256_v56 }
 0x2aa   :  { %v243_v61 = vmul.f32 %v374_v53, %v242_v57 }
 0x2ab   :  { %v258_v63 = vmul.f32 %v376_v54, %v257_v58 }
 0x2ac   :  { %v244_v1 = vadd.f32 %v374_v53, %v243_v61 }
 0x2ad   :  { %v259_v2 = vadd.f32 %v376_v54, %v258_v63 }
 0x2ae   :  { %v248_v5 = vsel %vm247_vm7, %v374_v53, %v244_v1 }
 0x2af   :  { %v263_v6 = vsel %vm262_vm8, %v376_v54, %v259_v2  ;;  %v253_v7 = vsel %vm250_vm9, %v252_v3, %v248_v5 }
 0x2b0   :  { %v268_v9 = vsel %vm265_vm10, %v267_v4, %v263_v6  ;;  %v254_v11 = vmul.f32 %v370_v42, %v253_v7 }
 0x2b1   :  { %v269_v12 = vmul.f32 %v372_v43, %v268_v9 }
 0x2b2   :  { %272 = vperm.xlu0 %363, %v254_v11  }
 0x2b3   :  { %277 = vperm.xlu1 %361, %v269_v12  }
 0x324   :  { %v273_v13 = vpop.permute.xlu0 %272 }
 0x325   :  { %v278_v14 = vpop.permute.xlu1 %277  ;;  %v280_v15 = vmul.f32 %v273_v13, %v601_v10 }
 0x326   :  { %v281_v16 = vmul.f32 %v278_v14, %v598_v8 }
 0x327   :  { %v282_v17 = vsel %vm92_vm0, %v280_v15, 0.0 }
 0x328   :  { %v289_v18 = vsel %vm92_vm0, %v281_v16, 0.0  ;;  %v283_v19 = vrot.slane %v282_v17, 4 }
 0x329   :  { %v290_v20 = vrot.slane %v289_v18, 4 }
 0x32a   :  { %v284_v21 = vadd.f32 %v283_v19, %v282_v17 }
 0x32b   :  { %v291_v22 = vadd.f32 %v290_v20, %v289_v18 }
 0x32c   :  { %v285_v23 = vrot.slane %v284_v21, 2 }
 0x32d   :  { %v292_v24 = vrot.slane %v291_v22, 2 }
 0x32e   :  { %v286_v25 = vadd.f32 %v285_v23, %v284_v21 }
 0x32f   :  { %v293_v26 = vadd.f32 %v292_v24, %v291_v22 }
 0x330   :  { %v287_v27 = vrot.slane %v286_v25, 1 }
 0x331   :  { %v294_v28 = vrot.slane %v293_v26, 1 }
 0x332   :  { %v288_v8 = vadd.f32 %v287_v27, %v286_v25 }
 0x333   :  { %v295_v10 = vadd.f32 %v294_v28, %v293_v26 }
 0x335   :  { %v298_v29 = vsel %vm201_vm1, %v295_v10, %v288_v8 }
 0x336   :  { %301 = vst.msk [vmem:[#allocation11] sm:$0x3] %vm300_vm11, %v298_v29 }
 0x337   :  { %323 = dma.vmem_to_hbm [thread:$0]  %s319_s21, 32, %s321_s24, [#allocation12]  }
 0x338   :  { %527 = dma.done.wait [#allocation4], 32  }
 0x339   :  { %528 = vsyncadd [#allocation4], 4294967264 }
 0x33a   :  { %529 = dma.done.wait [#allocation12], 32  }
 0x33b   :  { %530 = vsyncadd [#allocation12], 4294967264 }
 0x33c   :  { %332 = vsyncpa [#allocation3], 1 }
 0x33d   :  { %333 = vsyncpa [#allocation6], 1 }
 0x33e   :  { %334 = vsyncpa [#allocation9], 1 }
 0x33f   :  { %335 = vsyncpa [#allocation4], 1 }
 0x340   :  { %336 = vsyncpa [#allocation12], 1 }

// kernel: tpu_custom_call.1
= control target key start
LH: loop header
LB: loop body
LE: loop exit
PB: predicated region body
PF: predicated region fallthrough
CT: control target
= control target key end

     0   :  { %12 = vsyncpa [#allocation3], 0  ;;  %s629_s0 = inlined_call_operand.hbm [shape: f32[2,8,32], index: 0, kind: input, shape index: {}]   ;;  %s630_s1 = inlined_call_operand.hbm [shape: f32[2,32], index: 1, kind: input, shape index: {}]   ;;  %s631_s2 = inlined_call_operand.hbm [shape: f32[32,32], index: 2, kind: input, shape index: {}]   ;;  %s632_s3 = inlined_call_operand.hbm [shape: f32[32,32], index: 3, kind: input, shape index: {}]   ;;  %s633_s4 = inlined_call_operand.vmem [shape: f32[1,32], index: 4, kind: input, shape index: {}]   ;;  %s634_s5 = inlined_call_operand.hbm [shape: f32[2,8], index: 5, kind: output, shape index: {0}]   ;;  %s635_s6 = inlined_call_operand.hbm [shape: f32[2,32], index: 6, kind: output, shape index: {1}]  }
   0x1   :  { %13 = vsyncpa [#allocation6], 0 }
   0x2   :  { %14 = vsyncpa [#allocation9], 0 }
   0x3   :  { %15 = vsyncpa [#allocation4], 0  ;;  %s35_s23 = sshll.u32 %s630_s1, 4  ;;  %s36_s23 = int_to_ptr.hbm [resolvable:$true] %s35_s23 }
   0x4   :  { %16 = vsyncpa [#allocation12], 0  ;;  %s531_s24 = smov [#allocation5]   ;;  %s21_s28 = sshll.u32 %s629_s0, 4  ;;  %s22_s28 = int_to_ptr.hbm [resolvable:$true] %s21_s28 }
   0x5   :  { %s37_s25 = sshll.u32 %s531_s24, 4  ;;  %s532_s29 = smov [#allocation2]   ;;  %s38_s25 = int_to_ptr.vmem [resolvable:$true] %s37_s25 }
   0x6   :  { %40 = dma.hbm_to_vmem [thread:$0]  %s36_s23, 32, %s38_s25, [#allocation6]  }
   0x7   :  { %s23_s30 = sshll.u32 %s532_s29, 4  ;;  %s533_s7 = smov 128   ;;  %s24_s30 = int_to_ptr.vmem [resolvable:$true] %s23_s30 }
   0x8   :  { %s534_s8 = smov 8   ;;  %s45_s1 = sshll.u32 %s631_s2, 4  ;;  %s46_s1 = int_to_ptr.hbm [resolvable:$true] %s45_s1 }
   0x9   :  { %29 = dma.hbm_to_vmem [thread:$0]  %s22_s28, 256, %s24_s30, [#allocation3], %s533_s7, %s533_s7, %s534_s8  }
   0xa   :  { %s535_s11 = smov [#allocation7]   ;;  %s58_s0 = sshll.u32 %s632_s3, 4  ;;  %s59_s0 = int_to_ptr.hbm [resolvable:$true] %s58_s0 }
   0xb   :  { %s47_s12 = sshll.u32 %s535_s11, 4  ;;  %s536_s15 = smov [#allocation8]   ;;  %s48_s12 = int_to_ptr.vmem [resolvable:$true] %s47_s12 }
   0xc   :  { %53 = dma.hbm_to_vmem [thread:$0]  %s46_s1, 512, %s48_s12, [#allocation6], %s533_s7, %s533_s7, %s534_s8  }
   0xd   :  { %s60_s16 = sshll.u32 %s536_s15, 4  ;;  %s61_s16 = int_to_ptr.vmem [resolvable:$true] %s60_s16 }
   0xe   :  { %66 = dma.hbm_to_vmem [thread:$0]  %s59_s0, 512, %s61_s16, [#allocation9], %s533_s7, %s533_s7, %s534_s8  }
   0xf   :  { %521 = dma.done.wait [#allocation3], 256  }
  0x10   :  { %522 = vsyncadd [#allocation3], 4294967040 }
  0x11   :  { %523 = dma.done.wait [#allocation6], 544  }
  0x12   :  { %524 = vsyncadd [#allocation6], 4294966752 }
  0x13   :  { %525 = dma.done.wait [#allocation9], 512  }
  0x14   :  { %526 = vsyncadd [#allocation9], 4294966784  ;;  %vm92_vm0 = vcmask 261120   ;;  %v91_v0 = vld [vmem:[#allocation7 + $0x18] sm:$0xff]  ;;  %v90_v2 = vld [vmem:[#allocation7 + $0x10] sm:$0xff]  ;;  %v197_v27 = vlaneseq  ;;  %vm201_vm1 = vcmask 1041409  }
  0x15   :  { %v137_v1 = vld [vmem:[#allocation8 + $0x18] sm:$0xff]  ;;  %348 = vmatpush.xpose.msk.msra.mxu2 %vm92_vm0, %v91_v0  ;;  %337 = vmatpush.xpose.msk.msra.mxu0 %vm92_vm0, %v91_v0  ;;  %v136_v3 = vld [vmem:[#allocation8 + $0x10] sm:$0xff]  ;;  %v89_v4 = vld [vmem:[#allocation7 + $0x8] sm:$0xff]  ;;  %vm204_vm2 = vcmask 58368   ;;  %v537_v34 = vmov 0   ;;  %s309_s18 = sshll.u32 %s634_s5, 4  ;;  %s310_s18 = int_to_ptr.hbm [resolvable:$true] %s309_s18 }
  0x16   :  { %343 = vmatpush.xpose.msk.msra.mxu1 %vm92_vm0, %v137_v1  ;;  %v135_v5 = vld [vmem:[#allocation8 + $0x8] sm:$0xff]  ;;  %v88_v6 = vld [vmem:[#allocation7] sm:$0xff]  ;;  %v598_v8 = vld [vmem:[#allocation2 + $0x8] sm:$0xff]  ;;  %v198_v28 = vand.u32 127, %v197_v27  ;;  %362 = vset.pattern.permute.xlu2 %v537_v34  ;;  %s538_s19 = smov [#allocation10]   ;;  %s539_s5 = smov [#allocation11]  }
  0x17   :  { %v134_v7 = vld [vmem:[#allocation8] sm:$0xff]  ;;  %v87_v9 = vld [vmem:[#allocation5] sm:$0x3]  ;;  %v601_v10 = vld [vmem:[#allocation2] sm:$0xff]  ;;  %361 = vset.pattern.permute.xlu1 %v537_v34  ;;  %363 = vset.pattern.permute.xlu0 %v537_v34  ;;  %s307_s20 = sshll.u32 %s538_s19, 4  ;;  %s318_s21 = sshll.u32 %s539_s5, 4  ;;  %s308_s20 = int_to_ptr.vmem [resolvable:$true] %s307_s20  ;;  %s319_s21 = int_to_ptr.vmem [resolvable:$true] %s318_s21 }
  0x18   :  { %v364_v19 = vld [vmem:[%s633_s4] ss:$0 sm:$0xff]  ;;  %s320_s24 = sshll.u32 %s635_s6, 4  ;;  %vm300_vm11 = vcmask 254976   ;;  %s321_s24 = int_to_ptr.hbm [resolvable:$true] %s320_s24 }
  0x19   :  { %349 = vmatpush.xpose.msk.msra.mxu2 %vm92_vm0, %v90_v2  ;;  %338 = vmatpush.xpose.msk.msra.mxu0 %vm92_vm0, %v90_v2 }
  0x1a   :  { %344 = vmatpush.xpose.msk.msra.mxu1 %vm92_vm0, %v136_v3 }
  0x1d   :  { %350 = vmatpush.xpose.msk.msra.mxu2 %vm92_vm0, %v89_v4  ;;  %339 = vmatpush.xpose.msk.msra.mxu0 %vm92_vm0, %v89_v4 }
  0x1e   :  { %345 = vmatpush.xpose.msk.msra.mxu1 %vm92_vm0, %v135_v5 }
  0x21   :  { %351 = vmatpush.xpose.msk.msra.mxu2 %vm92_vm0, %v88_v6  ;;  %340 = vmatpush.xpose.msk.msra.mxu0 %vm92_vm0, %v88_v6 }
  0x22   :  { %346 = vmatpush.xpose.msk.msra.mxu1 %vm92_vm0, %v134_v7 }
  0x24   :  { %342 = vmatmul.msk.f32.vlgmr.msra.gmra.mxu2 %vm92_vm0, %v598_v8  ;;  %341 = vmatmul.msk.f32.vlgmr.msra.gmra.mxu0 %vm92_vm0, %v601_v10 }
  0x25   :  { %347 = vmatmul.msk.f32.vlgmr.msra.gmra.mxu1 %vm92_vm0, %v87_v9 }
  0xa1   :  { %v128_v14 = vpop.f32.mrf.mxu0 }
  0xa2   :  { %v170_v11 = vpop.f32.mrf.mxu1 }
  0xa3   :  { %v174_v12 = vrot.slane %v170_v11, 1  ;;  %v175_v13 = vperm.slane %v170_v11, 0 }
  0xa5   :  { %v179_v15 = vadd.f32 %v175_v13, %v128_v14  ;;  %v176_v16 = vperm.slane %v174_v12, 0 }
  0xa7   :  { %365 = vtanh.f32 %v179_v15  ;;  %v131_v17 = vpop.f32.mrf.mxu2 }
  0xa8   :  { %v180_v18 = vadd.f32 %v176_v16, %v131_v17 }
  0xaa   :  { %367 = vtanh.f32 %v180_v18 }
  0xad   :  { %v366_v20 = vpop.eup %365 }
  0xae   :  { %v187_v21 = vmul.f32 %v366_v20, %v364_v19 }
  0xb0   :  { %v189_v22 = vsel %vm92_vm0, %v187_v21, 0.0  ;;  %v368_v23 = vpop.eup %367 }
  0xb1   :  { %190 = vadd.xlane.f32.xlu0 %v189_v22  ;;  %v188_v24 = vmul.f32 %v368_v23, %v364_v19 }
  0xb3   :  { %v192_v25 = vsel %vm92_vm0, %v188_v24, 0.0 }
  0xb9   :  { %193 = vadd.xlane.f32.xlu0 %v192_v25 }
 0x124   :  { %v191_v26 = vpop.xlane.xlu0 %190 }
 0x125   :  { %v199_v30 = vperm.slane %v191_v26, %v198_v28 }
 0x12c   :  { %v194_v29 = vpop.xlane.xlu0 %193 }
 0x12d   :  { %v200_v31 = vperm.slane %v194_v29, %v198_v28 }
 0x12f   :  { %v202_v32 = vsel %vm201_vm1, %v200_v31, %v199_v30 }
 0x130   :  { %v206_v33 = vsel %vm204_vm2, %v202_v32, -inf  ;;  %205 = vst.msk [vmem:[#allocation10] sm:$0x3] %vm204_vm2, %v202_v32 }
 0x131   :  { %207 = vmax.xlane.f32.xlu1 %v206_v33  ;;  %312 = dma.vmem_to_hbm [thread:$0]  %s308_s20, 32, %s310_s18, [#allocation4]  }
 0x1a4   :  { %v208_v35 = vpop.xlane.xlu1 %207 }
 0x1a5   :  { %v210_v36 = vperm.slane %v208_v35, 0  ;;  %v211_v37 = vperm.slane %v208_v35, 1 }
 0x1a7   :  { %v214_v38 = vsub.f32 %v191_v26, %v210_v36  ;;  %v215_v39 = vsub.f32 %v194_v29, %v211_v37 }
 0x1a9   :  { %v216_v40 = vmul.f32 1.442695, %v214_v38  ;;  %v218_v41 = vmul.f32 1.442695, %v215_v39 }
 0x1ab   :  { %369 = vpow2.f32 %v216_v40 }
 0x1ac   :  { %371 = vpow2.f32 %v218_v41 }
 0x1b1   :  { %v370_v42 = vpop.eup %369 }
 0x1b2   :  { %v372_v43 = vpop.eup %371  ;;  %223 = vperm.xlu1 %361, %v370_v42  }
 0x1b3   :  { %226 = vperm.xlu2 %362, %v372_v43  }
 0x20d   :  { %v227_v44 = vpop.permute.xlu2 %226 }
 0x20e   :  { %v229_v46 = vperm.slane %v227_v44, %v198_v28 }
 0x224   :  { %v224_v45 = vpop.permute.xlu1 %223 }
 0x225   :  { %v228_v47 = vperm.slane %v224_v45, %v198_v28 }
 0x227   :  { %v230_v48 = vsel %vm201_vm1, %v229_v46, %v228_v47 }
 0x228   :  { %v232_v49 = vsel %vm204_vm2, %v230_v48, 0.0 }
 0x229   :  { %233 = vadd.xlane.f32.xlu2 %v232_v49 }
 0x29c   :  { %v234_v50 = vpop.xlane.xlu2 %233 }
 0x29d   :  { %v236_v51 = vperm.slane %v234_v50, 0  ;;  %v237_v52 = vperm.slane %v234_v50, 1 }
 0x29f   :  { %373 = vrcp.f32 %v236_v51  ;;  %v251_v59 = vand.u32 2147483648, %v236_v51  ;;  %v266_v60 = vand.u32 2147483648, %v237_v52  ;;  %v249_v62 = vand.u32 2147483647, %v236_v51 }
 0x2a0   :  { %375 = vrcp.f32 %v237_v52  ;;  %v264_v0 = vand.u32 2147483647, %v237_v52  ;;  %vm245_vm5 = vweird.f32 %v236_v51  ;;  %vm260_vm6 = vweird.f32 %v237_v52 }
 0x2a1   :  { %v252_v3 = vor.u32 1.1754944e-38, %v251_v59  ;;  %v267_v4 = vor.u32 1.1754944e-38, %v266_v60  ;;  %vm250_vm9 = vcmp.eq.f32.partialorder %v249_v62, 8.507059e+37 }
 0x2a2   :  { %vm265_vm10 = vcmp.eq.f32.partialorder %v264_v0, 8.507059e+37 }
 0x2a5   :  { %v374_v53 = vpop.eup %373 }
 0x2a6   :  { %v376_v54 = vpop.eup %375  ;;  %v241_v55 = vmul.f32 %v374_v53, %v236_v51  ;;  %vm246_vm3 = vweird.f32 %v374_v53 }
 0x2a7   :  { %v256_v56 = vmul.f32 %v376_v54, %v237_v52  ;;  %vm261_vm4 = vweird.f32 %v376_v54  ;;  %vm247_vm7 = vmor %vm245_vm5, %vm246_vm3 }
 0x2a8   :  { %v242_v57 = vsub.f32 1.0, %v241_v55  ;;  %vm262_vm8 = vmor %vm260_vm6, %vm261_vm4 }
 0x2a9   :  { %v257_v58 = vsub.f32 1.0, %v256_v56 }
 0x2aa   :  { %v243_v61 = vmul.f32 %v374_v53, %v242_v57 }
 0x2ab   :  { %v258_v63 = vmul.f32 %v376_v54, %v257_v58 }
 0x2ac   :  { %v244_v1 = vadd.f32 %v374_v53, %v243_v61 }
 0x2ad   :  { %v259_v2 = vadd.f32 %v376_v54, %v258_v63 }
 0x2ae   :  { %v248_v5 = vsel %vm247_vm7, %v374_v53, %v244_v1 }
 0x2af   :  { %v263_v6 = vsel %vm262_vm8, %v376_v54, %v259_v2  ;;  %v253_v7 = vsel %vm250_vm9, %v252_v3, %v248_v5 }
 0x2b0   :  { %v268_v9 = vsel %vm265_vm10, %v267_v4, %v263_v6  ;;  %v254_v11 = vmul.f32 %v370_v42, %v253_v7 }
 0x2b1   :  { %v269_v12 = vmul.f32 %v372_v43, %v268_v9 }
 0x2b2   :  { %272 = vperm.xlu0 %363, %v254_v11  }
 0x2b3   :  { %277 = vperm.xlu1 %361, %v269_v12  }
 0x324   :  { %v273_v13 = vpop.permute.xlu0 %272 }
 0x325   :  { %v278_v14 = vpop.permute.xlu1 %277  ;;  %v280_v15 = vmul.f32 %v273_v13, %v601_v10 }
 0x326   :  { %v281_v16 = vmul.f32 %v278_v14, %v598_v8 }
 0x327   :  { %v282_v17 = vsel %vm92_vm0, %v280_v15, 0.0 }
 0x328   :  { %v289_v18 = vsel %vm92_vm0, %v281_v16, 0.0  ;;  %v283_v19 = vrot.slane %v282_v17, 4 }
 0x329   :  { %v290_v20 = vrot.slane %v289_v18, 4 }
 0x32a   :  { %v284_v21 = vadd.f32 %v283_v19, %v282_v17 }
 0x32b   :  { %v291_v22 = vadd.f32 %v290_v20, %v289_v18 }
 0x32c   :  { %v285_v23 = vrot.slane %v284_v21, 2 }
 0x32d   :  { %v292_v24 = vrot.slane %v291_v22, 2 }
 0x32e   :  { %v286_v25 = vadd.f32 %v285_v23, %v284_v21 }
 0x32f   :  { %v293_v26 = vadd.f32 %v292_v24, %v291_v22 }
 0x330   :  { %v287_v27 = vrot.slane %v286_v25, 1 }
 0x331   :  { %v294_v28 = vrot.slane %v293_v26, 1 }
 0x332   :  { %v288_v8 = vadd.f32 %v287_v27, %v286_v25 }
 0x333   :  { %v295_v10 = vadd.f32 %v294_v28, %v293_v26 }
 0x335   :  { %v298_v29 = vsel %vm201_vm1, %v295_v10, %v288_v8 }
 0x336   :  { %301 = vst.msk [vmem:[#allocation11] sm:$0x3] %vm300_vm11, %v298_v29 }
 0x337   :  { %323 = dma.vmem_to_hbm [thread:$0]  %s319_s21, 32, %s321_s24, [#allocation12]  }
 0x338   :  { %527 = dma.done.wait [#allocation4], 32  }
 0x339   :  { %528 = vsyncadd [#allocation4], 4294967264 }
 0x33a   :  { %529 = dma.done.wait [#allocation12], 32  }
 0x33b   :  { %530 = vsyncadd [#allocation12], 4294967264 }
 0x33c   :  { %332 = vsyncpa [#allocation3], 1 }
 0x33d   :  { %333 = vsyncpa [#allocation6], 1 }
 0x33e   :  { %334 = vsyncpa [#allocation9], 1 }
 0x33f   :  { %335 = vsyncpa [#allocation4], 1 }
 0x340   :  { %336 = vsyncpa [#allocation12], 1 }

</bundles_post_ra>
